<compile_context>
chip_gen: v7x
topology: tpu7x:2x2x1
jax: 0.10.0
libtpu: 0.0.40
codegen_flags: <defaults>
</compile_context>

<pallas_src>
import jax
import jax.numpy as jnp
import numpy as np
from jax.experimental import pallas as pl
from jax.experimental.pallas import tpu as pltpu


# ----------------------------- Pallas kernel ------------------------------ #
def _fused_mlp_kernel(
    code_ref, dyn_ref, ir_ref,              # (B, code_dim/dyn_dim/ir_dim)
    w1c_ref, w1d_ref, w1i_ref,               # layer-1 branch weights (*, 128)
    w2_ref, w3_ref, w4_ref, w5_ref,          # (384,256) (256,128) (128,128) (128,3)
    bias_ref,                                 # (5, 384) packed biases
    out_ref,                                  # (B, 3)
):
    def mm(x, w_ref):
        return jnp.dot(x, w_ref[...], preferred_element_type=jnp.float32)

    def relu(x):
        return jnp.maximum(x, 0.0)

    # Layer 1: block-diagonal -> three lane-aligned 128-wide matmuls, concat in VMEM.
    s1 = jnp.concatenate(
        [mm(code_ref[...], w1c_ref),
         mm(dyn_ref[...], w1d_ref),
         mm(ir_ref[...], w1i_ref)], axis=1)            # (B, 384)
    h = relu(s1 + bias_ref[0:1, :])                    # (B, 384)
    h = relu(mm(h, w2_ref) + bias_ref[1:2, :256])      # (B, 256) block-diag branch L2
    h = relu(mm(h, w3_ref) + bias_ref[2:3, :128])      # (B, 128) heads ∘ softmax-scaled fusion L1
    h = relu(mm(h, w4_ref) + bias_ref[3:4, :128])      # (B, 128) fusion L2 (padded)
    out_ref[...] = mm(h, w5_ref) + bias_ref[4:5, :3]   # (B, 3)   fusion L3


# ------------------------------- Wrapper ----------------------------------- #
def ablation_forward(code_x, dyn_x, ir_x, fused_params):
    """fused_params: (W1c, W1d, W1i, W2, W3, W4, W5, bias_pack) from fuse_params()."""
    batch = code_x.shape[0]
    operands = (code_x, dyn_x, ir_x) + tuple(fused_params)

    w1c, w1d, w1i, w2, w3, w4, w5, bias_pack = fused_params
    weights = (w1c, w1d, w1i, w2, w3, w4, w5)
    flops = 2 * batch * sum(int(w.shape[0]) * int(w.shape[1]) for w in weights)
    bytes_accessed = 4 * (
        sum(int(w.size) for w in weights) + int(bias_pack.size)
        + batch * (code_x.shape[1] + dyn_x.shape[1] + ir_x.shape[1])
        + batch * 3)

    vmem_spec = pl.BlockSpec(memory_space=pltpu.MemorySpace.VMEM)
    return pl.pallas_call(
        _fused_mlp_kernel,
        out_shape=jax.ShapeDtypeStruct((batch, 3), jnp.float32),
        in_specs=[vmem_spec] * len(operands),
        out_specs=vmem_spec,
        cost_estimate=pl.CostEstimate(
            flops=flops, transcendentals=0, bytes_accessed=bytes_accessed),
    )(*operands)


# ------------------------- Parameter fusion (offline) ----------------------- #
def fuse_params(params):
    """Fold the original per-branch parameters into lane-padded fused operands.

    Done in numpy float64 so the precomputed products add no extra error
    relative to the unfused reference path.  Zero padding is placed only in
    positions that stay zero through ReLU, so the forward pass is unchanged.
    """
    (cw1, cb1, cw2, cb2, cw3, cb3,
     dw1, db1, dw2, db2,
     iw1, ib1, iw2, ib2, iw3, ib3,
     fw1, fb1, fw2, fb2, fw3, fb3,
     modal_w) = [np.asarray(p, np.float64) for p in params]

    embed = cw3.shape[1]
    dyn_dim = dw1.shape[0]

    # Softmax of the modal weights is input independent -> fold into fusion L1.
    mw = modal_w.reshape(-1)
    e = np.exp(mw - mw.max())
    p = e / e.sum()                                    # (3,)
    fw1a = fw1[:embed]
    fw1b = fw1[embed:2 * embed]
    fw1c = fw1[2 * embed:3 * embed]

    # ---- Layer 1: per-branch weights, dyn output padded 64 -> 128 lanes ----
    W1c = cw1                                          # (code_dim, 128)
    W1d = np.zeros((dyn_dim, 128), np.float64)
    W1d[:, :64] = dw1                                  # (dyn_dim, 128)
    W1i = iw1                                          # (ir_dim, 128)
    B1 = np.zeros((1, 384), np.float64)
    B1[:, 0:128] = cb1
    B1[:, 128:192] = db1
    B1[:, 256:384] = ib1

    # ---- Layer 2: block-diagonal (384 -> 256); active cols [0:64|64:96|96:160] ----
    W2 = np.zeros((384, 256), np.float64)
    W2[0:128, 0:64] = cw2
    W2[128:192, 64:64 + embed] = dw2
    W2[256:384, 64 + embed:128 + embed] = iw2
    B2 = np.zeros((1, 384), np.float64)
    B2[:, 0:64] = cb2
    B2[:, 64:64 + embed] = db2
    B2[:, 64 + embed:128 + embed] = ib2

    # ---- Layer 3: branch heads composed with p-scaled fusion L1 (256 -> 128) ----
    W3 = np.zeros((256, 128), np.float64)
    W3[0:64, :] = cw3 @ (p[0] * fw1a)                  # code head (linear, no ReLU)
    W3[64:64 + embed, :] = p[1] * fw1b                 # dyn embedding (post-ReLU)
    W3[64 + embed:128 + embed, :] = iw3 @ (p[2] * fw1c)  # ir head (linear, no ReLU)
    B3 = np.zeros((1, 384), np.float64)
    B3[:, 0:128] = fb1 + cb3 @ (p[0] * fw1a) + ib3 @ (p[2] * fw1c)

    # ---- Layer 4: fusion L2 padded (128 -> 128) ----
    W4 = np.zeros((128, 128), np.float64)
    W4[:, :64] = fw2
    B4 = np.zeros((1, 384), np.float64)
    B4[:, 0:64] = fb2

    # ---- Layer 5: fusion L3 padded (128 -> 3) ----
    W5 = np.zeros((128, 3), np.float64)
    W5[:64, :] = fw3
    B5 = np.zeros((1, 384), np.float64)
    B5[:, 0:3] = fb3

    bias_pack = np.concatenate([B1, B2, B3, B4, B5], axis=0)   # (5, 384)

    return tuple(jnp.asarray(a, jnp.float32)
                 for a in (W1c, W1d, W1i, W2, W3, W4, W5, bias_pack))


# --------------------------- Parameter creation ----------------------------- #
def make_params(key, code_dim, dyn_dim, ir_dim, embed_dim=32):
    """Deterministic synthetic init matching the PyTorch module layout.

    Linear weights stored pre-transposed as [in, out]; biases as [1, out].
    """
    def lin(k, fan_in, fan_out):
        kw, kb = jax.random.split(k)
        scale = 1.0 / np.sqrt(fan_in)
        w = jax.random.uniform(kw, (fan_in, fan_out), jnp.float32, -scale, scale)
        b = jax.random.uniform(kb, (1, fan_out), jnp.float32, -scale, scale)
        return w, b

    keys = jax.random.split(key, 12)
    # code branch
    cw1, cb1 = lin(keys[0], code_dim, 128)
    cw2, cb2 = lin(keys[1], 128, 64)
    cw3, cb3 = lin(keys[2], 64, embed_dim)
    # dynamic branch
    dw1, db1 = lin(keys[3], dyn_dim, 64)
    dw2, db2 = lin(keys[4], 64, embed_dim)
    # ir branch
    iw1, ib1 = lin(keys[5], ir_dim, 128)
    iw2, ib2 = lin(keys[6], 128, 64)
    iw3, ib3 = lin(keys[7], 64, embed_dim)
    # fusion
    fw1, fb1 = lin(keys[8], 3 * embed_dim, 128)
    fw2, fb2 = lin(keys[9], 128, 64)
    fw3, fb3 = lin(keys[10], 64, 3)
    # modal weights: nn.Parameter(torch.ones(3))
    modal_w = jnp.ones((3,), jnp.float32)

    return (
        cw1, cb1, cw2, cb2, cw3, cb3,
        dw1, db1, dw2, db2,
        iw1, ib1, iw2, ib2, iw3, ib3,
        fw1, fb1, fw2, fb2, fw3, fb3,
        modal_w,
    )


# ------------------------------ Reference ----------------------------------- #
def reference_forward(code_x, dyn_x, ir_x, params):
    """Faithful (unfused) reference of the PyTorch module forward."""
    (cw1, cb1, cw2, cb2, cw3, cb3,
     dw1, db1, dw2, db2,
     iw1, ib1, iw2, ib2, iw3, ib3,
     fw1, fb1, fw2, fb2, fw3, fb3,
     modal_w) = params

    relu = lambda x: jnp.maximum(x, 0.0)
    lin = lambda x, w, b: x @ w + b

    c = lin(relu(lin(relu(lin(code_x, cw1, cb1)), cw2, cb2)), cw3, cb3)
    d = relu(lin(relu(lin(dyn_x, dw1, db1)), dw2, db2))
    r = lin(relu(lin(relu(lin(ir_x, iw1, ib1)), iw2, ib2)), iw3, ib3)
    p = jax.nn.softmax(modal_w)
    fused = jnp.concatenate([p[0] * c, p[1] * d, p[2] * r], axis=1)
    f = relu(lin(relu(lin(fused, fw1, fb1)), fw2, fb2))
    return lin(f, fw3, fb3)


# --------------------------------- Main ------------------------------------- #
if __name__ == "__main__":
    BATCH = 8
    CODE_DIM, DYN_DIM, IR_DIM, EMBED = 48, 24, 40, 32

    root = jax.random.PRNGKey(0)
    k_params, k_code, k_dyn, k_ir = jax.random.split(root, 4)

    params = make_params(k_params, CODE_DIM, DYN_DIM, IR_DIM, EMBED)
    fused = fuse_params(params)   # one-time, input-independent weight fusion + padding

    code_x = jax.random.normal(k_code, (BATCH, CODE_DIM), jnp.float32)
    dyn_x = jax.random.normal(k_dyn, (BATCH, DYN_DIM), jnp.float32)
    ir_x = jax.random.normal(k_ir, (BATCH, IR_DIM), jnp.float32)

    out = jax.block_until_ready(ablation_forward(code_x, dyn_x, ir_x, fused))
    ref = jax.block_until_ready(reference_forward(code_x, dyn_x, ir_x, params))

    assert out.shape == (BATCH, 3), out.shape
    np.testing.assert_allclose(np.asarray(out), np.asarray(ref),
                               rtol=1e-4, atol=1e-5)
    print("KERNEL_OK")
</pallas_src>

<mosaic_0001>
module attributes {stable_mosaic.version = 11 : i64} {
  func.func @_fused_mlp_kernel(%arg0: memref<8x48xf32, #tpu.memory_space<vmem>>, %arg1: memref<8x24xf32, #tpu.memory_space<vmem>>, %arg2: memref<8x40xf32, #tpu.memory_space<vmem>>, %arg3: memref<48x128xf32, #tpu.memory_space<vmem>>, %arg4: memref<24x128xf32, #tpu.memory_space<vmem>>, %arg5: memref<40x128xf32, #tpu.memory_space<vmem>>, %arg6: memref<384x256xf32, #tpu.memory_space<vmem>>, %arg7: memref<256x128xf32, #tpu.memory_space<vmem>>, %arg8: memref<128x128xf32, #tpu.memory_space<vmem>>, %arg9: memref<128x3xf32, #tpu.memory_space<vmem>>, %arg10: memref<5x384xf32, #tpu.memory_space<vmem>>, %arg11: memref<8x3xf32, #tpu.memory_space<vmem>>) attributes {dimension_semantics = [], scalar_prefetch = 0 : i64, scratch_operands = 0 : i64, tpu.core_type = #tpu.core_type<tc>} {
    %c0 = arith.constant 0 : index
    %c0_0 = arith.constant 0 : index
    %0 = vector.load %arg0[%c0, %c0_0] : memref<8x48xf32, #tpu.memory_space<vmem>>, vector<8x48xf32>
    %c0_1 = arith.constant 0 : index
    %c0_2 = arith.constant 0 : index
    %1 = vector.load %arg3[%c0_1, %c0_2] : memref<48x128xf32, #tpu.memory_space<vmem>>, vector<48x128xf32>
    %cst = arith.constant dense<0.000000e+00> : vector<8x128xf32>
    %2 = tpu.matmul %0, %1, %cst {dimension_numbers = #tpu.dot_dimension_numbers<[1], [0], [0], [1], [0, 0, 1, 1], [], []>} : vector<8x48xf32>, vector<48x128xf32>, vector<8x128xf32> -> vector<8x128xf32>
    %c0_3 = arith.constant 0 : index
    %c0_4 = arith.constant 0 : index
    %3 = vector.load %arg1[%c0_3, %c0_4] : memref<8x24xf32, #tpu.memory_space<vmem>>, vector<8x24xf32>
    %c0_5 = arith.constant 0 : index
    %c0_6 = arith.constant 0 : index
    %4 = vector.load %arg4[%c0_5, %c0_6] : memref<24x128xf32, #tpu.memory_space<vmem>>, vector<24x128xf32>
    %cst_7 = arith.constant dense<0.000000e+00> : vector<8x128xf32>
    %5 = tpu.matmul %3, %4, %cst_7 {dimension_numbers = #tpu.dot_dimension_numbers<[1], [0], [0], [1], [0, 0, 1, 1], [], []>} : vector<8x24xf32>, vector<24x128xf32>, vector<8x128xf32> -> vector<8x128xf32>
    %c0_8 = arith.constant 0 : index
    %c0_9 = arith.constant 0 : index
    %6 = vector.load %arg2[%c0_8, %c0_9] : memref<8x40xf32, #tpu.memory_space<vmem>>, vector<8x40xf32>
    %c0_10 = arith.constant 0 : index
    %c0_11 = arith.constant 0 : index
    %7 = vector.load %arg5[%c0_10, %c0_11] : memref<40x128xf32, #tpu.memory_space<vmem>>, vector<40x128xf32>
    %cst_12 = arith.constant dense<0.000000e+00> : vector<8x128xf32>
    %8 = tpu.matmul %6, %7, %cst_12 {dimension_numbers = #tpu.dot_dimension_numbers<[1], [0], [0], [1], [0, 0, 1, 1], [], []>} : vector<8x40xf32>, vector<40x128xf32>, vector<8x128xf32> -> vector<8x128xf32>
    %9 = tpu.concatenate %2, %5, %8 in 1 : vector<8x128xf32>, vector<8x128xf32>, vector<8x128xf32> -> vector<8x384xf32>
    %c0_13 = arith.constant 0 : index
    %c0_14 = arith.constant 0 : index
    %10 = vector.load %arg10[%c0_13, %c0_14] : memref<5x384xf32, #tpu.memory_space<vmem>>, vector<1x384xf32>
    %11 = vector.broadcast %10 : vector<1x384xf32> to vector<8x384xf32>
    %12 = arith.addf %9, %11 : vector<8x384xf32>
    %cst_15 = arith.constant 0.000000e+00 : f32
    %13 = vector.broadcast %cst_15 : f32 to vector<8x384xf32>
    %14 = arith.maximumf %12, %13 : vector<8x384xf32>
    %c0_16 = arith.constant 0 : index
    %c0_17 = arith.constant 0 : index
    %15 = vector.load %arg6[%c0_16, %c0_17] : memref<384x256xf32, #tpu.memory_space<vmem>>, vector<384x256xf32>
    %cst_18 = arith.constant dense<0.000000e+00> : vector<8x256xf32>
    %16 = tpu.matmul %14, %15, %cst_18 {dimension_numbers = #tpu.dot_dimension_numbers<[1], [0], [0], [1], [0, 0, 1, 1], [], []>} : vector<8x384xf32>, vector<384x256xf32>, vector<8x256xf32> -> vector<8x256xf32>
    %c1 = arith.constant 1 : index
    %c0_19 = arith.constant 0 : index
    %17 = vector.load %arg10[%c1, %c0_19] : memref<5x384xf32, #tpu.memory_space<vmem>>, vector<1x256xf32>
    %18 = vector.broadcast %17 : vector<1x256xf32> to vector<8x256xf32>
    %19 = arith.addf %16, %18 : vector<8x256xf32>
    %cst_20 = arith.constant 0.000000e+00 : f32
    %20 = vector.broadcast %cst_20 : f32 to vector<8x256xf32>
    %21 = arith.maximumf %19, %20 : vector<8x256xf32>
    %c0_21 = arith.constant 0 : index
    %c0_22 = arith.constant 0 : index
    %22 = vector.load %arg7[%c0_21, %c0_22] : memref<256x128xf32, #tpu.memory_space<vmem>>, vector<256x128xf32>
    %cst_23 = arith.constant dense<0.000000e+00> : vector<8x128xf32>
    %23 = tpu.matmul %21, %22, %cst_23 {dimension_numbers = #tpu.dot_dimension_numbers<[1], [0], [0], [1], [0, 0, 1, 1], [], []>} : vector<8x256xf32>, vector<256x128xf32>, vector<8x128xf32> -> vector<8x128xf32>
    %c2 = arith.constant 2 : index
    %c0_24 = arith.constant 0 : index
    %24 = vector.load %arg10[%c2, %c0_24] : memref<5x384xf32, #tpu.memory_space<vmem>>, vector<1x128xf32>
    %25 = vector.broadcast %24 : vector<1x128xf32> to vector<8x128xf32>
    %26 = arith.addf %23, %25 : vector<8x128xf32>
    %cst_25 = arith.constant 0.000000e+00 : f32
    %27 = vector.broadcast %cst_25 : f32 to vector<8x128xf32>
    %28 = arith.maximumf %26, %27 : vector<8x128xf32>
    %c0_26 = arith.constant 0 : index
    %c0_27 = arith.constant 0 : index
    %29 = vector.load %arg8[%c0_26, %c0_27] : memref<128x128xf32, #tpu.memory_space<vmem>>, vector<128x128xf32>
    %cst_28 = arith.constant dense<0.000000e+00> : vector<8x128xf32>
    %30 = tpu.matmul %28, %29, %cst_28 {dimension_numbers = #tpu.dot_dimension_numbers<[1], [0], [0], [1], [0, 0, 1, 1], [], []>} : vector<8x128xf32>, vector<128x128xf32>, vector<8x128xf32> -> vector<8x128xf32>
    %c3 = arith.constant 3 : index
    %c0_29 = arith.constant 0 : index
    %31 = vector.load %arg10[%c3, %c0_29] : memref<5x384xf32, #tpu.memory_space<vmem>>, vector<1x128xf32>
    %32 = vector.broadcast %31 : vector<1x128xf32> to vector<8x128xf32>
    %33 = arith.addf %30, %32 : vector<8x128xf32>
    %cst_30 = arith.constant 0.000000e+00 : f32
    %34 = vector.broadcast %cst_30 : f32 to vector<8x128xf32>
    %35 = arith.maximumf %33, %34 : vector<8x128xf32>
    %c0_31 = arith.constant 0 : index
    %c0_32 = arith.constant 0 : index
    %36 = vector.load %arg9[%c0_31, %c0_32] : memref<128x3xf32, #tpu.memory_space<vmem>>, vector<128x3xf32>
    %cst_33 = arith.constant dense<0.000000e+00> : vector<8x3xf32>
    %37 = tpu.matmul %35, %36, %cst_33 {dimension_numbers = #tpu.dot_dimension_numbers<[1], [0], [0], [1], [0, 0, 1, 1], [], []>} : vector<8x128xf32>, vector<128x3xf32>, vector<8x3xf32> -> vector<8x3xf32>
    %c4 = arith.constant 4 : index
    %c0_34 = arith.constant 0 : index
    %38 = vector.load %arg10[%c4, %c0_34] : memref<5x384xf32, #tpu.memory_space<vmem>>, vector<1x3xf32>
    %39 = vector.broadcast %38 : vector<1x3xf32> to vector<8x3xf32>
    %40 = arith.addf %37, %39 : vector<8x3xf32>
    %c0_35 = arith.constant 0 : index
    %c0_36 = arith.constant 0 : index
    %41 = vector.load %arg11[%c0_35, %c0_36] : memref<8x3xf32, #tpu.memory_space<vmem>>, vector<8x3xf32>
    tpu.vector_store %arg11[%c0_35, %c0_36], %40 {strides = array<i32>} : memref<8x3xf32, #tpu.memory_space<vmem>>, vector<8x3xf32>,
    return
  }
}

</mosaic_0001>

<bundles_post_ra>
// kernel: tpu_custom_call.1
= control target key start
LH: loop header
LB: loop body
LE: loop exit
PB: predicated region body
PF: predicated region fallthrough
CT: control target
= control target key end

     0   :  { %16 = vsyncpa [#allocation3], 0  ;;  %s1832_s0 = inlined_call_operand.vmem [shape: f32[8,48], index: 0, kind: input, shape index: {}]   ;;  %s1833_s1 = inlined_call_operand.hbm [shape: f32[8,24], index: 1, kind: input, shape index: {}]   ;;  %s1834_s2 = inlined_call_operand.hbm [shape: f32[8,40], index: 2, kind: input, shape index: {}]   ;;  %s1835_s3 = inlined_call_operand.hbm [shape: f32[48,128], index: 3, kind: input, shape index: {}]   ;;  %s1836_s4 = inlined_call_operand.vmem [shape: f32[24,128], index: 4, kind: input, shape index: {}]   ;;  %s1837_s5 = inlined_call_operand.hbm [shape: f32[40,128], index: 5, kind: input, shape index: {}]   ;;  %s1838_s6 = inlined_call_operand.hbm [shape: f32[384,256], index: 6, kind: input, shape index: {}]   ;;  %s1839_s7 = inlined_call_operand.hbm [shape: f32[256,128], index: 7, kind: input, shape index: {}]   ;;  %s1840_s8 = inlined_call_operand.vmem [shape: f32[128,128], index: 8, kind: input, shape index: {}]   ;;  %s1841_s9 = inlined_call_operand.vmem [shape: f32[128,3], index: 9, kind: input, shape index: {}]   ;;  %s1842_s10 = inlined_call_operand.hbm [shape: f32[5,384], index: 10, kind: input, shape index: {}]   ;;  %s1843_s11 = inlined_call_operand.vmem [shape: f32[8,3], index: 11, kind: output, shape index: {}]  }
   0x1   :  { %17 = vsyncpa [#allocation5], 0 }
   0x2   :  { %18 = vsyncpa [#allocation8], 0 }
   0x3   :  { %19 = vsyncpa [#allocation11], 0  ;;  %s1501_s17 = smov [#allocation4]   ;;  %s1339_s21 = scalar_lea.hbm %s1834_s2, 128 }
   0x4   :  { %s38_s18 = sshll.u32 %s1501_s17, 4  ;;  %p1340_p0 = scmp.ne.s32.totalorder %s1834_s2, %s1339_s21  ;;  %s39_s18 = int_to_ptr.vmem [resolvable:$true] %s38_s18 }
   0x5   :  { %p1343_p1 = scmp.lt.u32.totalorder %s1339_s21, %s1834_s2 }
   0x7   :  { %p1345_p2 = pnand %p1343_p1, %p1340_p0 }
   0x9   :  { %1348 = shalt.err (!%p1345_p2)
}
   0xa   :  { %s1349_s26 = scalar_lea.vmem %s39_s18, 128  ;;  %p1354_p4 = scmp.lt.s32.totalorder %s39_s18, %s39_s18 }
   0xb   :  { %p1350_p3 = scmp.ne.s32.totalorder %s39_s18, %s1349_s26  ;;  %p1355_p5 = scmp.lt.s32.totalorder %s1349_s26, %s1349_s26 }
   0xd   :  { %p1356_p6 = por %p1355_p5, %p1354_p4 }
   0xf   :  { %p1357_p7 = pnand %p1356_p6, %p1350_p3 }
  0x11   :  { %1360 = shalt.err (!%p1357_p7)
}
  0x12   :  { %41 = dma.hbm_to_vmem [thread:$0]  %s1834_s2, 128, %s39_s18, [#allocation5]  }
  0x13   :  { %s1502_s29 = smov [#allocation7]   ;;  %s1503_s12 = smov [#allocation10]  }
  0x14   :  { %s61_s30 = sshll.u32 %s1502_s29, 4  ;;  %s85_s13 = sshll.u32 %s1503_s12, 4  ;;  %s62_s30 = int_to_ptr.vmem [resolvable:$true] %s61_s30  ;;  %s86_s13 = int_to_ptr.vmem [resolvable:$true] %s85_s13 }
  0x15   :  { %s1361_s16 = scalar_lea.hbm %s1837_s5, 640 }
  0x16   :  { %p1362_p8 = scmp.ne.s32.totalorder %s1837_s5, %s1361_s16  ;;  %p1365_p9 = scmp.lt.u32.totalorder %s1361_s16, %s1837_s5 }
  0x18   :  { %p1367_p10 = pnand %p1365_p9, %p1362_p8 }
  0x1a   :  { %1370 = shalt.err (!%p1367_p10)
}
  0x1b   :  { %s1371_s2 = scalar_lea.vmem %s62_s30, 640  ;;  %p1376_p12 = scmp.lt.s32.totalorder %s62_s30, %s62_s30 }
  0x1c   :  { %p1372_p11 = scmp.ne.s32.totalorder %s62_s30, %s1371_s2  ;;  %p1377_p13 = scmp.lt.s32.totalorder %s1371_s2, %s1371_s2 }
  0x1e   :  { %p1378_p0 = por %p1377_p13, %p1376_p12 }
  0x20   :  { %p1379_p1 = pnand %p1378_p0, %p1372_p11 }
  0x22   :  { %1382 = shalt.err (!%p1379_p1)
}
  0x23   :  { %s1504_s18 = smov 128   ;;  %s1505_s22 = smov 8  }
  0x24   :  { %67 = dma.hbm_to_vmem [thread:$0]  %s1837_s5, 640, %s62_s30, [#allocation8], %s1504_s18, %s1504_s18, %s1505_s22  }
  0x25   :  { %s1383_s27 = scalar_lea.hbm %s1839_s7, 4096 }
  0x26   :  { %p1384_p2 = scmp.ne.s32.totalorder %s1839_s7, %s1383_s27  ;;  %p1387_p3 = scmp.lt.u32.totalorder %s1383_s27, %s1839_s7 }
  0x28   :  { %p1389_p4 = pnand %p1387_p3, %p1384_p2 }
  0x2a   :  { %1392 = shalt.err (!%p1389_p4)
}
  0x2b   :  { %s1393_s15 = scalar_lea.vmem %s86_s13, 4096  ;;  %p1398_p6 = scmp.lt.s32.totalorder %s86_s13, %s86_s13 }
  0x2c   :  { %p1394_p5 = scmp.ne.s32.totalorder %s86_s13, %s1393_s15  ;;  %p1399_p7 = scmp.lt.s32.totalorder %s1393_s15, %s1393_s15 }
  0x2e   :  { %p1400_p8 = por %p1399_p7, %p1398_p6 }
  0x30   :  { %p1401_p9 = pnand %p1400_p8, %p1394_p5 }
  0x32   :  { %1404 = shalt.err (!%p1401_p9)
}
  0x33   :  { %91 = dma.hbm_to_vmem [thread:$0]  %s1839_s7, 4096, %s86_s13, [#allocation11], %s1504_s18, %s1504_s18, %s1505_s22  }
  0x34   :  { %s1506_s16 = smov [#allocation2]   ;;  %s1507_s19 = smov [#allocation6]  }
  0x35   :  { %s28_s17 = sshll.u32 %s1506_s16, 4  ;;  %s47_s20 = sshll.u32 %s1507_s19, 4  ;;  %s29_s17 = int_to_ptr.vmem [resolvable:$true] %s28_s17  ;;  %s48_s20 = int_to_ptr.vmem [resolvable:$true] %s47_s20 }
  0x36   :  { %s1405_s23 = scalar_lea.hbm %s1833_s1, 128 }
  0x37   :  { %p1406_p10 = scmp.ne.s32.totalorder %s1833_s1, %s1405_s23  ;;  %p1409_p11 = scmp.lt.u32.totalorder %s1405_s23, %s1833_s1 }
  0x39   :  { %p1411_p12 = pnand %p1409_p11, %p1406_p10 }
  0x3b   :  { %1414 = shalt.err (!%p1411_p12)
}
  0x3c   :  { %s1415_s7 = scalar_lea.vmem %s29_s17, 128  ;;  %p1420_p0 = scmp.lt.s32.totalorder %s29_s17, %s29_s17 }
  0x3d   :  { %p1416_p13 = scmp.ne.s32.totalorder %s29_s17, %s1415_s7  ;;  %p1421_p1 = scmp.lt.s32.totalorder %s1415_s7, %s1415_s7 }
  0x3f   :  { %p1422_p2 = por %p1421_p1, %p1420_p0 }
  0x41   :  { %p1423_p3 = pnand %p1422_p2, %p1416_p13 }
  0x43   :  { %1426 = shalt.err (!%p1423_p3)
}
  0x44   :  { %31 = dma.hbm_to_vmem [thread:$0]  %s1833_s1, 128, %s29_s17, [#allocation3]  }
  0x45   :  { %s1427_s14 = scalar_lea.hbm %s1835_s3, 768 }
  0x46   :  { %p1428_p4 = scmp.ne.s32.totalorder %s1835_s3, %s1427_s14  ;;  %p1431_p5 = scmp.lt.u32.totalorder %s1427_s14, %s1835_s3 }
  0x48   :  { %p1433_p6 = pnand %p1431_p5, %p1428_p4 }
  0x4a   :  { %1436 = shalt.err (!%p1433_p6)
}
  0x4b   :  { %s1437_s19 = scalar_lea.vmem %s48_s20, 768  ;;  %p1442_p8 = scmp.lt.s32.totalorder %s48_s20, %s48_s20 }
  0x4c   :  { %p1438_p7 = scmp.ne.s32.totalorder %s48_s20, %s1437_s19  ;;  %p1443_p9 = scmp.lt.s32.totalorder %s1437_s19, %s1437_s19 }
  0x4e   :  { %p1444_p10 = por %p1443_p9, %p1442_p8 }
  0x50   :  { %p1445_p11 = pnand %p1444_p10, %p1438_p7 }
  0x52   :  { %1448 = shalt.err (!%p1445_p11)
}
  0x53   :  { %53 = dma.hbm_to_vmem [thread:$0]  %s1835_s3, 768, %s48_s20, [#allocation5], %s1504_s18, %s1504_s18, %s1505_s22  }
  0x54   :  { %s1508_s21 = smov [#allocation9]   ;;  %s1449_s25 = scalar_lea.hbm %s1838_s6, 12288 }
  0x55   :  { %s73_s2 = sshll.u32 %s1508_s21, 4  ;;  %p1450_p12 = scmp.ne.s32.totalorder %s1838_s6, %s1449_s25  ;;  %s74_s2 = int_to_ptr.vmem [resolvable:$true] %s73_s2 }
  0x56   :  { %p1453_p13 = scmp.lt.u32.totalorder %s1449_s25, %s1838_s6 }
  0x58   :  { %p1455_p0 = pnand %p1453_p13, %p1450_p12 }
  0x5a   :  { %1458 = shalt.err (!%p1455_p0)
}
  0x5b   :  { %s1459_s28 = scalar_lea.vmem %s74_s2, 12288  ;;  %p1464_p2 = scmp.lt.s32.totalorder %s74_s2, %s74_s2 }
  0x5c   :  { %p1460_p1 = scmp.ne.s32.totalorder %s74_s2, %s1459_s28  ;;  %p1465_p3 = scmp.lt.s32.totalorder %s1459_s28, %s1459_s28 }
  0x5e   :  { %p1466_p4 = por %p1465_p3, %p1464_p2 }
  0x60   :  { %p1467_p5 = pnand %p1466_p4, %p1460_p1 }
  0x62   :  { %1470 = shalt.err (!%p1467_p5)
}
  0x63   :  { %s1509_s3 = smov 256   ;;  %s1510_s18 = smov 16  }
  0x64   :  { %79 = dma.hbm_to_vmem [thread:$0]  %s1838_s6, 12288, %s74_s2, [#allocation8], %s1509_s3, %s1509_s3, %s1510_s18  }
  0x65   :  { %s1511_s29 = smov [#allocation12]   ;;  %s1471_s5 = scalar_lea.hbm %s1842_s10, 384 }
  0x66   :  { %s102_s12 = sshll.u32 %s1511_s29, 4  ;;  %p1472_p6 = scmp.ne.s32.totalorder %s1842_s10, %s1471_s5  ;;  %s103_s12 = int_to_ptr.vmem [resolvable:$true] %s102_s12 }
  0x67   :  { %p1475_p7 = scmp.lt.u32.totalorder %s1471_s5, %s1842_s10 }
  0x69   :  { %p1477_p8 = pnand %p1475_p7, %p1472_p6 }
  0x6b   :  { %1480 = shalt.err (!%p1477_p8)
}
  0x6c   :  { %s1481_s17 = scalar_lea.vmem %s103_s12, 384  ;;  %p1486_p10 = scmp.lt.s32.totalorder %s103_s12, %s103_s12 }
  0x6d   :  { %p1482_p9 = scmp.ne.s32.totalorder %s103_s12, %s1481_s17  ;;  %p1487_p11 = scmp.lt.s32.totalorder %s1481_s17, %s1481_s17 }
  0x6f   :  { %p1488_p12 = por %p1487_p11, %p1486_p10 }
  0x71   :  { %p1489_p13 = pnand %p1488_p12, %p1482_p9 }
  0x73   :  { %1492 = shalt.err (!%p1489_p13)
}
  0x74   :  { %105 = dma.hbm_to_vmem [thread:$0]  %s1842_s10, 384, %s103_s12, [#allocation11]  }
  0x75   :  { %1493 = dma.done.wait [#allocation3], 128  }
  0x76   :  { %1494 = vsyncadd [#allocation3], 4294967168 }
  0x77   :  { %1495 = dma.done.wait [#allocation5], 896  }
  0x78   :  { %1496 = vsyncadd [#allocation5], 4294966400 }
  0x79   :  { %1497 = dma.done.wait [#allocation8], 12928  }
  0x7a   :  { %1498 = vsyncadd [#allocation8], 4294954368 }
  0x7b   :  { %1499 = dma.done.wait [#allocation11], 4480  }
  0x7c   :  { %1500 = vsyncadd [#allocation11], 4294962816  ;;  %v1512_v0 = vmov 0.0|0.0   ;;  %vm1513_vm0 = vmmov 0   ;;  %v1514_v1 = vmov 0.0   ;;  %v128_v2 = vld [vmem:[#allocation6] sm:$0xff] }
  0x7d   :  { %1127 = vmatprep.subr.bf16.mxu0 %v1512_v0  ;;  %1136 = vmatprep.subr.bf16.mxu1 %v1512_v0  ;;  %v129_v3 = vld [vmem:[#allocation6 + $0x8] sm:$0xff]  ;;  %v130_v4 = vld [vmem:[#allocation6 + $0x10] sm:$0xff]  ;;  %v131_v6 = vld [vmem:[#allocation6 + $0x18] sm:$0xff]  ;;  %vm212_vm1 = vcmask 195584   ;;  %vm134_vm2 = vcmask 392192   ;;  %vm292_vm3 = vcmask 326656  }
  0x7e   :  { %1041 = vmatprep.mubr.msk.f32.mxu1 %vm1513_vm0, %v1514_v1  ;;  %1032 = vmatprep.mubr.msk.f32.mxu0 %vm1513_vm0, %v1514_v1  ;;  %v1128_v5 = vpack.c.bf16 %v129_v3, %v128_v2  ;;  %v209_v7 = vld [vmem:[%s1836_s4] sm:$0xff]  ;;  %v210_v8 = vld [vmem:[%s1836_s4 + $0x8] sm:$0xff]  ;;  %v1131_v10 = vpack.c.bf16 %v131_v6, %v130_v4  ;;  %v132_v12 = vld [vmem:[#allocation6 + $0x20] sm:$0xff]  ;;  %vm921_vm4 = vcmask 23552  }
  0x7f   :  { %v1137_v9 = vpack.c.bf16 %v210_v8, %v209_v7  ;;  %v287_v11 = vld [vmem:[#allocation7] sm:$0xff]  ;;  %v133_v13 = vld [vmem:[#allocation6 + $0x28] sm:$0xff]  ;;  %v288_v14 = vld [vmem:[#allocation7 + $0x8] sm:$0xff] }
  0x80   :  { %1129 = vmatpush3.bf16.msra.mxu0 %v1128_v5  ;;  %v211_v15 = vld [vmem:[%s1836_s4 + $0x10] sm:$0xff]  ;;  %v208_v17 = vld [vmem:[#allocation2] sm:$0xff]  ;;  %v1140_v18 = vpack.c.bf16 %v288_v14, %v287_v11  ;;  %v1134_v20 = vpack.c.bf16 %v133_v13, %v132_v12  ;;  %v290_v22 = vld [vmem:[#allocation7 + $0x18] sm:$0xff] }
  0x81   :  { %1130 = vmatprep.subr.bf16.mxu0 %v1512_v0  ;;  %1138 = vmatpush3.bf16.msra.mxu1 %v1137_v9  ;;  %v390_v16 = vld [vmem:[#allocation9 + $0x8] sm:$0xff]  ;;  %v392_v19 = vld [vmem:[#allocation9 + $0x18] sm:$0xff]  ;;  %v389_v24 = vld [vmem:[#allocation9] sm:$0xff] }
  0x82   :  { %1039 = vmatprep.subr.mxu1 %v1514_v1  ;;  %v289_v21 = vld [vmem:[#allocation7 + $0x10] sm:$0xff]  ;;  %v1145_v23 = vpack.c.bf16 %v392_v19, %v390_v16  ;;  %v391_v25 = vld [vmem:[#allocation9 + $0x10] sm:$0xff]  ;;  %v396_v27 = vld [vmem:[#allocation9 + $0x38] sm:$0xff] }
  0x83   :  { %v394_v26 = vld [vmem:[#allocation9 + $0x28] sm:$0xff]  ;;  %v1143_v28 = vpack.c.bf16 %v290_v22, %v289_v21  ;;  %v127_v29 = vld [vmem:[%s1832_s0] sm:$0xff]  ;;  %v1147_v30 = vpack.c.bf16 %v391_v25, %v389_v24  ;;  %v393_v32 = vld [vmem:[#allocation9 + $0x20] sm:$0xff] }
  0x84   :  { %1132 = vmatpush3.bf16.msra.mxu0 %v1131_v10  ;;  %v1149_v31 = vpack.c.bf16 %v396_v27, %v394_v26  ;;  %v395_v33 = vld [vmem:[#allocation9 + $0x30] sm:$0xff]  ;;  %v398_v34 = vld [vmem:[#allocation9 + $0x48] sm:$0xff]  ;;  %v400_v35 = vld [vmem:[#allocation9 + $0x58] sm:$0xff] }
  0x85   :  { %1133 = vmatprep.subr.bf16.mxu0 %v1512_v0  ;;  %1040 = vmatpush3.msra.mxu1 %v211_v15  ;;  %v291_v36 = vld [vmem:[#allocation7 + $0x20] sm:$0xff]  ;;  %v1151_v37 = vpack.c.bf16 %v395_v33, %v393_v32  ;;  %v286_v38 = vld [vmem:[#allocation4] sm:$0xff]  ;;  %v1153_v39 = vpack.c.bf16 %v400_v35, %v398_v34  ;;  %v399_v41 = vld [vmem:[#allocation9 + $0x50] sm:$0xff] }
  0x86   :  { %1042 = vmatmul.mubr.msk.f32.vlgmr.msra.gmra.mrb[0].mxu1 %vm212_vm1, %v208_v17  ;;  %1139 = vmatprep.subr.bf16.mxu1 %v1512_v0  ;;  %v397_v40 = vld [vmem:[#allocation9 + $0x40] sm:$0xff]  ;;  %v402_v42 = vld [vmem:[#allocation9 + $0x68] sm:$0xff]  ;;  %v404_v43 = vld [vmem:[#allocation9 + $0x78] sm:$0xff] }
  0x87   :  { %1141 = vmatpush3.bf16.msra.mxu1 %v1140_v18  ;;  %1054 = vmatprep.mubr.msk.f32.mxu1 %vm1513_vm0, %v1514_v1  ;;  %v1155_v44 = vpack.c.bf16 %v399_v41, %v397_v40  ;;  %v1157_v45 = vpack.c.bf16 %v404_v43, %v402_v42  ;;  %v401_v46 = vld [vmem:[#allocation9 + $0x60] sm:$0xff]  ;;  %v403_v47 = vld [vmem:[#allocation9 + $0x70] sm:$0xff]  ;;  %v406_v48 = vld [vmem:[#allocation9 + $0x88] sm:$0xff] }
  0x88   :  { %1135 = vmatpush3.bf16.msra.mxu0 %v1134_v20  ;;  %1142 = vmatprep.subr.bf16.mxu1 %v1512_v0  ;;  %v408_v49 = vld [vmem:[#allocation9 + $0x98] sm:$0xff]  ;;  %v1159_v50 = vpack.c.bf16 %v403_v47, %v401_v46  ;;  %v405_v52 = vld [vmem:[#allocation9 + $0x80] sm:$0xff]  ;;  %v407_v53 = vld [vmem:[#allocation9 + $0x90] sm:$0xff] }
  0x89   :  { %1146 = vmatprep.subr.bf16.mxu0 %v1145_v23  ;;  %v1161_v51 = vpack.c.bf16 %v408_v49, %v406_v48  ;;  %v410_v54 = vld [vmem:[#allocation9 + $0xa8] sm:$0xff]  ;;  %v412_v55 = vld [vmem:[#allocation9 + $0xb8] sm:$0xff]  ;;  %v1163_v56 = vpack.c.bf16 %v407_v53, %v405_v52  ;;  %v409_v58 = vld [vmem:[#allocation9 + $0xa0] sm:$0xff] }
  0x8a   :  { %v1165_v57 = vpack.c.bf16 %v412_v55, %v410_v54  ;;  %v411_v59 = vld [vmem:[#allocation9 + $0xb0] sm:$0xff]  ;;  %v414_v60 = vld [vmem:[#allocation9 + $0xc8] sm:$0xff]  ;;  %v416_v61 = vld [vmem:[#allocation9 + $0xd8] sm:$0xff] }
  0x8b   :  { %1033 = vmatmul.mubr.msk.f32.vlgmr.msra.gmra.mrb[0].mxu0 %vm134_vm2, %v127_v29  ;;  %1144 = vmatpush3.bf16.msra.mxu1 %v1143_v28  ;;  %v1167_v62 = vpack.c.bf16 %v411_v59, %v409_v58  ;;  %v1169_v63 = vpack.c.bf16 %v416_v61, %v414_v60  ;;  %v413_v2 = vld [vmem:[#allocation9 + $0xc0] sm:$0xff]  ;;  %v415_v3 = vld [vmem:[#allocation9 + $0xd0] sm:$0xff]  ;;  %v418_v4 = vld [vmem:[#allocation9 + $0xe8] sm:$0xff] }
  0x8c   :  { %1052 = vmatprep.subr.mxu1 %v1514_v1  ;;  %1148 = vmatpush1.bf16.msra.mxu0 %v1147_v30  ;;  %v420_v5 = vld [vmem:[#allocation9 + $0xf8] sm:$0xff]  ;;  %v1171_v6 = vpack.c.bf16 %v415_v3, %v413_v2  ;;  %v417_v8 = vld [vmem:[#allocation9 + $0xe0] sm:$0xff]  ;;  %v419_v9 = vld [vmem:[#allocation9 + $0xf0] sm:$0xff] }
  0x8d   :  { %1150 = vmatprep.subr.bf16.mxu0 %v1149_v31  ;;  %v1173_v7 = vpack.c.bf16 %v420_v5, %v418_v4  ;;  %v422_v10 = vld [vmem:[#allocation9 + $0x108] sm:$0xff]  ;;  %v424_v11 = vld [vmem:[#allocation9 + $0x118] sm:$0xff]  ;;  %v1175_v12 = vpack.c.bf16 %v419_v9, %v417_v8  ;;  %v421_v14 = vld [vmem:[#allocation9 + $0x100] sm:$0xff] }
  0x8e   :  { %v1177_v13 = vpack.c.bf16 %v424_v11, %v422_v10  ;;  %v423_v15 = vld [vmem:[#allocation9 + $0x110] sm:$0xff]  ;;  %v426_v16 = vld [vmem:[#allocation9 + $0x128] sm:$0xff]  ;;  %v428_v17 = vld [vmem:[#allocation9 + $0x138] sm:$0xff] }
  0x8f   :  { %1053 = vmatpush3.msra.mxu1 %v291_v36  ;;  %v1179_v18 = vpack.c.bf16 %v423_v15, %v421_v14  ;;  %v1181_v19 = vpack.c.bf16 %v428_v17, %v426_v16  ;;  %v425_v20 = vld [vmem:[#allocation9 + $0x120] sm:$0xff]  ;;  %v427_v21 = vld [vmem:[#allocation9 + $0x130] sm:$0xff]  ;;  %v430_v22 = vld [vmem:[#allocation9 + $0x148] sm:$0xff] }
  0x90   :  { %1055 = vmatmul.mubr.msk.f32.vlgmr.msra.gmra.mrb[2].mxu1 %vm292_vm3, %v286_v38  ;;  %1152 = vmatpush1.bf16.msra.mxu0 %v1151_v37  ;;  %v432_v23 = vld [vmem:[#allocation9 + $0x158] sm:$0xff]  ;;  %v1183_v24 = vpack.c.bf16 %v427_v21, %v425_v20  ;;  %v429_v26 = vld [vmem:[#allocation9 + $0x140] sm:$0xff]  ;;  %v431_v27 = vld [vmem:[#allocation9 + $0x150] sm:$0xff] }
  0x91   :  { %1154 = vmatprep.subr.bf16.mxu0 %v1153_v39  ;;  %v1185_v25 = vpack.c.bf16 %v432_v23, %v430_v22  ;;  %v434_v28 = vld [vmem:[#allocation9 + $0x168] sm:$0xff]  ;;  %v436_v29 = vld [vmem:[#allocation9 + $0x178] sm:$0xff]  ;;  %v1187_v30 = vpack.c.bf16 %v431_v27, %v429_v26  ;;  %v433_v32 = vld [vmem:[#allocation9 + $0x160] sm:$0xff] }
  0x92   :  { %v1189_v31 = vpack.c.bf16 %v436_v29, %v434_v28  ;;  %v435_v33 = vld [vmem:[#allocation9 + $0x170] sm:$0xff]  ;;  %v438_v34 = vld [vmem:[#allocation9 + $0x188] sm:$0xff]  ;;  %v440_v35 = vld [vmem:[#allocation9 + $0x198] sm:$0xff] }
  0x93   :  { %v1191_v36 = vpack.c.bf16 %v435_v33, %v433_v32  ;;  %v1193_v37 = vpack.c.bf16 %v440_v35, %v438_v34  ;;  %v437_v38 = vld [vmem:[#allocation9 + $0x180] sm:$0xff]  ;;  %v439_v39 = vld [vmem:[#allocation9 + $0x190] sm:$0xff]  ;;  %v442_v40 = vld [vmem:[#allocation9 + $0x1a8] sm:$0xff] }
  0x94   :  { %1156 = vmatpush1.bf16.msra.mxu0 %v1155_v44  ;;  %v444_v41 = vld [vmem:[#allocation9 + $0x1b8] sm:$0xff]  ;;  %v1195_v42 = vpack.c.bf16 %v439_v39, %v437_v38  ;;  %v441_v44 = vld [vmem:[#allocation9 + $0x1a0] sm:$0xff]  ;;  %v446_v46 = vld [vmem:[#allocation9 + $0x1c8] sm:$0xff]  ;;  %v368_v39 = vlaneseq }
  0x95   :  { %1158 = vmatprep.subr.bf16.mxu0 %v1157_v45  ;;  %v1197_v43 = vpack.c.bf16 %v444_v41, %v442_v40  ;;  %v443_v45 = vld [vmem:[#allocation9 + $0x1b0] sm:$0xff]  ;;  %v448_v47 = vld [vmem:[#allocation9 + $0x1d8] sm:$0xff]  ;;  %v450_v53 = vld [vmem:[#allocation9 + $0x1e8] sm:$0xff] }
  0x96   :  { %v1199_v48 = vpack.c.bf16 %v443_v45, %v441_v44  ;;  %v1201_v49 = vpack.c.bf16 %v448_v47, %v446_v46  ;;  %v452_v54 = vld [vmem:[#allocation9 + $0x1f8] sm:$0xff]  ;;  %v454_v59 = vld [vmem:[#allocation9 + $0x208] sm:$0xff]  ;;  %v642_v2 = vld [vmem:[#allocation10] sm:$0xff]  ;;  %v1694_v40 = vshrl.u32 %v368_v39, 7 }
  0x97   :  { %v1205_v55 = vpack.c.bf16 %v452_v54, %v450_v53  ;;  %v456_v60 = vld [vmem:[#allocation9 + $0x218] sm:$0xff]  ;;  %v643_v4 = vld [vmem:[#allocation10 + $0x8] sm:$0xff]  ;;  %v660_v5 = vld [vmem:[#allocation10 + $0x90] sm:$0xff] }
  0x98   :  { %1160 = vmatpush1.bf16.msra.mxu0 %v1159_v50  ;;  %v445_v50 = vld [vmem:[#allocation9 + $0x1c0] sm:$0xff]  ;;  %v1209_v61 = vpack.c.bf16 %v456_v60, %v454_v59  ;;  %v644_v9 = vld [vmem:[#allocation10 + $0x10] sm:$0xff]  ;;  %v645_v10 = vld [vmem:[#allocation10 + $0x18] sm:$0xff]  ;;  %v374_v41 = vsub.s32 1, %v1694_v40  ;;  %v370_v44 = vsub.s32 0, %v1694_v40 }
  0x99   :  { %1162 = vmatprep.subr.bf16.mxu0 %v1161_v51  ;;  %v447_v51 = vld [vmem:[#allocation9 + $0x1d0] sm:$0xff]  ;;  %v662_v11 = vld [vmem:[#allocation10 + $0xa0] sm:$0xff]  ;;  %v647_v16 = vld [vmem:[#allocation10 + $0x28] sm:$0xff] }
  0x9a   :  { %v1203_v52 = vpack.c.bf16 %v447_v51, %v445_v50  ;;  %v646_v15 = vld [vmem:[#allocation10 + $0x20] sm:$0xff]  ;;  %v664_v17 = vld [vmem:[#allocation10 + $0xb0] sm:$0xff]  ;;  %v649_v22 = vld [vmem:[#allocation10 + $0x38] sm:$0xff] }
  0x9b   :  { %v648_v21 = vld [vmem:[#allocation10 + $0x30] sm:$0xff]  ;;  %v666_v23 = vld [vmem:[#allocation10 + $0xc0] sm:$0xff]  ;;  %v651_v28 = vld [vmem:[#allocation10 + $0x48] sm:$0xff] }
  0x9c   :  { %1164 = vmatpush1.bf16.msra.mxu0 %v1163_v56  ;;  %v449_v56 = vld [vmem:[#allocation9 + $0x1e0] sm:$0xff]  ;;  %v668_v29 = vld [vmem:[#allocation10 + $0xd0] sm:$0xff]  ;;  %v653_v34 = vld [vmem:[#allocation10 + $0x58] sm:$0xff] }
  0x9d   :  { %1166 = vmatprep.subr.bf16.mxu0 %v1165_v57  ;;  %v451_v57 = vld [vmem:[#allocation9 + $0x1f0] sm:$0xff]  ;;  %v650_v27 = vld [vmem:[#allocation10 + $0x40] sm:$0xff]  ;;  %v458_v53 = vld [vmem:[#allocation9 + $0x228] sm:$0xff] }
  0x9e   :  { %v1207_v58 = vpack.c.bf16 %v451_v57, %v449_v56  ;;  %v652_v33 = vld [vmem:[#allocation10 + $0x50] sm:$0xff]  ;;  %v670_v35 = vld [vmem:[#allocation10 + $0xe0] sm:$0xff]  ;;  %v460_v54 = vld [vmem:[#allocation9 + $0x238] sm:$0xff] }
  0x9f   :  { %v453_v50 = vld [vmem:[#allocation9 + $0x200] sm:$0xff]  ;;  %v455_v51 = vld [vmem:[#allocation9 + $0x210] sm:$0xff]  ;;  %v1213_v59 = vpack.c.bf16 %v460_v54, %v458_v53  ;;  %v657_v53 = vld [vmem:[#allocation10 + $0x78] sm:$0xff] }
  0xa0   :  { %1168 = vmatpush1.bf16.msra.mxu0 %v1167_v62  ;;  %v658_v62 = vld [vmem:[#allocation10 + $0x80] sm:$0xff]  ;;  %v1211_v57 = vpack.c.bf16 %v455_v51, %v453_v50  ;;  %v483_v39 = vld [vmem:[#allocation9 + $0x2f0] sm:$0xff]  ;;  %v673_v51 = vld [vmem:[#allocation10 + $0xf8] sm:$0xff] }
  0xa1   :  { %1170 = vmatprep.subr.bf16.mxu0 %v1169_v63  ;;  %v659_v63 = vld [vmem:[#allocation10 + $0x88] sm:$0xff]  ;;  %v457_v60 = vld [vmem:[#allocation9 + $0x220] sm:$0xff]  ;;  %v672_v50 = vld [vmem:[#allocation10 + $0xf0] sm:$0xff] }
  0xa2   :  { %v1241_v3 = vpack.c.bf16 %v659_v63, %v658_v62  ;;  %v462_v62 = vld [vmem:[#allocation9 + $0x248] sm:$0xff]  ;;  %v464_v63 = vld [vmem:[#allocation9 + $0x258] sm:$0xff] }
  0xa4   :  { %1172 = vmatpush1.bf16.msra.mxu0 %v1171_v6  ;;  %v661_v6 = vld [vmem:[#allocation10 + $0x98] sm:$0xff]  ;;  %1242 = vmatprep.subr.bf16.mxu1 %v1241_v3 }
  0xa5   :  { %1174 = vmatprep.subr.bf16.mxu0 %v1173_v7  ;;  %v1243_v7 = vpack.c.bf16 %v643_v4, %v642_v2  ;;  %v1245_v8 = vpack.c.bf16 %v661_v6, %v660_v5  ;;  %v1217_v5 = vpack.c.bf16 %v464_v63, %v462_v62  ;;  %v461_v6 = vld [vmem:[#allocation9 + $0x240] sm:$0xff] }
  0xa6   :  { %v747_v62 = vld [vmem:[%s1840_s8 + $0x8] sm:$0xff] }
  0xa7   :  { %1244 = vmatpush3.bf16.msra.mxu1 %v1243_v7  ;;  %v463_v7 = vld [vmem:[#allocation9 + $0x250] sm:$0xff] }
  0xa8   :  { %1176 = vmatpush1.bf16.msra.mxu0 %v1175_v12  ;;  %v663_v12 = vld [vmem:[#allocation10 + $0xa8] sm:$0xff]  ;;  %1246 = vmatprep.subr.bf16.mxu1 %v1245_v8 }
  0xa9   :  { %1178 = vmatprep.subr.bf16.mxu0 %v1177_v13  ;;  %v1247_v13 = vpack.c.bf16 %v645_v10, %v644_v9  ;;  %v1249_v14 = vpack.c.bf16 %v663_v12, %v662_v11  ;;  %v466_v8 = vld [vmem:[#allocation9 + $0x268] sm:$0xff]  ;;  %v468_v9 = vld [vmem:[#allocation9 + $0x278] sm:$0xff]  ;;  %v1219_v10 = vpack.c.bf16 %v463_v7, %v461_v6  ;;  %v465_v12 = vld [vmem:[#allocation9 + $0x260] sm:$0xff] }
  0xaa   :  { %v1221_v11 = vpack.c.bf16 %v468_v9, %v466_v8  ;;  %v751_v6 = vld [vmem:[%s1840_s8 + $0x28] sm:$0xff]  ;;  %v752_v8 = vld [vmem:[%s1840_s8 + $0x30] sm:$0xff]  ;;  %v753_v9 = vld [vmem:[%s1840_s8 + $0x38] sm:$0xff] }
  0xab   :  { %1248 = vmatpush3.bf16.msra.mxu1 %v1247_v13  ;;  %v467_v13 = vld [vmem:[#allocation9 + $0x270] sm:$0xff] }
  0xac   :  { %1180 = vmatpush1.bf16.msra.mxu0 %v1179_v18  ;;  %v665_v18 = vld [vmem:[#allocation10 + $0xb8] sm:$0xff]  ;;  %1250 = vmatprep.subr.bf16.mxu1 %v1249_v14  ;;  %v470_v14 = vld [vmem:[#allocation9 + $0x288] sm:$0xff] }
  0xad   :  { %1182 = vmatprep.subr.bf16.mxu0 %v1181_v19  ;;  %v1251_v19 = vpack.c.bf16 %v647_v16, %v646_v15  ;;  %v1253_v20 = vpack.c.bf16 %v665_v18, %v664_v17  ;;  %v472_v15 = vld [vmem:[#allocation9 + $0x298] sm:$0xff]  ;;  %v1223_v16 = vpack.c.bf16 %v467_v13, %v465_v12  ;;  %v469_v18 = vld [vmem:[#allocation9 + $0x280] sm:$0xff] }
  0xae   :  { %v1225_v17 = vpack.c.bf16 %v472_v15, %v470_v14  ;;  %v755_v12 = vld [vmem:[%s1840_s8 + $0x48] sm:$0xff]  ;;  %v756_v14 = vld [vmem:[%s1840_s8 + $0x50] sm:$0xff]  ;;  %v757_v15 = vld [vmem:[%s1840_s8 + $0x58] sm:$0xff] }
  0xaf   :  { %1252 = vmatpush3.bf16.msra.mxu1 %v1251_v19  ;;  %v471_v19 = vld [vmem:[#allocation9 + $0x290] sm:$0xff] }
  0xb0   :  { %1184 = vmatpush1.bf16.msra.mxu0 %v1183_v24  ;;  %v667_v24 = vld [vmem:[#allocation10 + $0xc8] sm:$0xff]  ;;  %1254 = vmatprep.subr.bf16.mxu1 %v1253_v20 }
  0xb1   :  { %1186 = vmatprep.subr.bf16.mxu0 %v1185_v25  ;;  %v1255_v25 = vpack.c.bf16 %v649_v22, %v648_v21  ;;  %v1257_v26 = vpack.c.bf16 %v667_v24, %v666_v23  ;;  %v474_v20 = vld [vmem:[#allocation9 + $0x2a8] sm:$0xff]  ;;  %v476_v21 = vld [vmem:[#allocation9 + $0x2b8] sm:$0xff]  ;;  %v1227_v22 = vpack.c.bf16 %v471_v19, %v469_v18  ;;  %v473_v24 = vld [vmem:[#allocation9 + $0x2a0] sm:$0xff] }
  0xb2   :  { %v1229_v23 = vpack.c.bf16 %v476_v21, %v474_v20  ;;  %v759_v18 = vld [vmem:[%s1840_s8 + $0x68] sm:$0xff]  ;;  %v760_v20 = vld [vmem:[%s1840_s8 + $0x70] sm:$0xff]  ;;  %v761_v21 = vld [vmem:[%s1840_s8 + $0x78] sm:$0xff] }
  0xb3   :  { %1256 = vmatpush3.bf16.msra.mxu1 %v1255_v25  ;;  %v475_v25 = vld [vmem:[#allocation9 + $0x2b0] sm:$0xff] }
  0xb4   :  { %1188 = vmatpush1.bf16.msra.mxu0 %v1187_v30  ;;  %v669_v30 = vld [vmem:[#allocation10 + $0xd8] sm:$0xff]  ;;  %1258 = vmatprep.subr.bf16.mxu1 %v1257_v26  ;;  %v478_v26 = vld [vmem:[#allocation9 + $0x2c8] sm:$0xff] }
  0xb5   :  { %1190 = vmatprep.subr.bf16.mxu0 %v1189_v31  ;;  %v1259_v31 = vpack.c.bf16 %v651_v28, %v650_v27  ;;  %v1261_v32 = vpack.c.bf16 %v669_v30, %v668_v29  ;;  %v480_v27 = vld [vmem:[#allocation9 + $0x2d8] sm:$0xff]  ;;  %v378_v28 = vsub.s32 2, %v1694_v40  ;;  %v1231_v29 = vpack.c.bf16 %v475_v25, %v473_v24  ;;  %v748_v40 = vld [vmem:[%s1840_s8 + $0x10] sm:$0xff]  ;;  %v674_v24 = vld [vmem:[#allocation12 + $0x2] ss:$0 sm:$0xff] }
  0xb6   :  { %v1233_v30 = vpack.c.bf16 %v480_v27, %v478_v26  ;;  %v834_v27 = vld [vmem:[%s1841_s9] sm:$0xff] }
  0xb7   :  { %1260 = vmatpush3.bf16.msra.mxu1 %v1259_v31  ;;  %v477_v31 = vld [vmem:[#allocation9 + $0x2c0] sm:$0xff] }
  0xb8   :  { %1192 = vmatpush1.bf16.msra.mxu0 %v1191_v36  ;;  %v671_v36 = vld [vmem:[#allocation10 + $0xe8] sm:$0xff]  ;;  %1262 = vmatprep.subr.bf16.mxu1 %v1261_v32  ;;  %v479_v32 = vld [vmem:[#allocation9 + $0x2d0] sm:$0xff] }
  0xb9   :  { %1194 = vmatprep.subr.bf16.mxu0 %v1193_v37  ;;  %v1263_v37 = vpack.c.bf16 %v653_v34, %v652_v33  ;;  %v1265_v38 = vpack.c.bf16 %v671_v36, %v670_v35  ;;  %v482_v33 = vld [vmem:[#allocation9 + $0x2e8] sm:$0xff]  ;;  %v484_v34 = vld [vmem:[#allocation9 + $0x2f8] sm:$0xff]  ;;  %v1235_v36 = vpack.c.bf16 %v479_v32, %v477_v31 }
  0xba   :  { %v836_v32 = vld [vmem:[%s1841_s9 + $0x10] sm:$0xff] }
  0xbb   :  { %1264 = vmatpush3.bf16.msra.mxu1 %v1263_v37  ;;  %v1237_v37 = vpack.c.bf16 %v484_v34, %v482_v33  ;;  %v837_v33 = vld [vmem:[%s1841_s9 + $0x18] sm:$0xff] }
  0xbc   :  { %1196 = vmatpush1.bf16.msra.mxu0 %v1195_v42  ;;  %1266 = vmatprep.subr.bf16.mxu1 %v1265_v38  ;;  %v1697_v42 = vld [vmem:[#allocation12] ss:$8 sm:$0x7]  ;;  %v1301_v34 = vpack.c.bf16 %v837_v33, %v836_v32 }
  0xbd   :  { %1198 = vmatprep.subr.bf16.mxu0 %v1197_v43  ;;  %v375_v43 = vrot.slane %v1697_v42, %v374_v41  ;;  %v379_v35 = vrot.slane %v1697_v42, %v378_v28  ;;  %v481_v38 = vld [vmem:[#allocation9 + $0x2e0] sm:$0xff] }
  0xbe   :  { %v835_v28 = vld [vmem:[%s1841_s9 + $0x8] sm:$0xff] }
  0xc0   :  { %1200 = vmatpush1.bf16.msra.mxu0 %v1199_v48  ;;  %v371_v48 = vrot.slane %v1697_v42, %v370_v44  ;;  %v1269_v42 = vpack.c.bf16 %v673_v51, %v672_v50  ;;  %v846_v50 = vld [vmem:[%s1841_s9 + $0x60] sm:$0xff]  ;;  %v847_v51 = vld [vmem:[%s1841_s9 + $0x68] sm:$0xff] }
  0xc1   :  { %1202 = vmatprep.subr.bf16.mxu0 %v1201_v49 }
  0xc4   :  { %1204 = vmatpush1.bf16.msra.mxu0 %v1203_v52 }
  0xc5   :  { %1206 = vmatprep.subr.bf16.mxu0 %v1205_v55 }
  0xc8   :  { %1208 = vmatpush1.bf16.msra.mxu0 %v1207_v58 }
  0xc9   :  { %1210 = vmatprep.subr.bf16.mxu0 %v1209_v61  ;;  %v459_v61 = vld [vmem:[#allocation9 + $0x230] sm:$0xff] }
  0xca   :  { %v1215_v3 = vpack.c.bf16 %v459_v61, %v457_v60  ;;  %v746_v61 = vld [vmem:[%s1840_s8] sm:$0xff] }
 0x159   :  { %v282_v45 = vpop.f32.mrb[0].mxu1 }
 0x15a   :  { %v384_v46 = vadd.f32 %v375_v43, %v282_v45  ;;  %v1043_v47 = vpop.f32.mrb[1].mxu1  ;;  %v1239_v45 = vpack.c.bf16 %v483_v39, %v481_v38  ;;  %v840_v38 = vld [vmem:[%s1841_s9 + $0x30] sm:$0xff] }
 0x15b   :  { %v654_v47 = vld [vmem:[#allocation10 + $0x60] sm:$0xff] }
 0x15c   :  { %v387_v49 = vmax.f32 %v384_v46, 0.0 }
 0x15e   :  { %v204_v52 = vpop.f32.mrb[0].mxu0  ;;  %562 = vmatprep.mubr.f32.mxu0 %v387_v49 }
 0x15f   :  { %v383_v55 = vadd.f32 %v371_v48, %v204_v52  ;;  %v1034_v56 = vpop.f32.mrb[1].mxu0  ;;  %v655_v48 = vld [vmem:[#allocation10 + $0x68] sm:$0xff]  ;;  %v656_v52 = vld [vmem:[#allocation10 + $0x70] sm:$0xff] }
 0x160   :  { %v1267_v49 = vpack.c.bf16 %v655_v48, %v654_v47  ;;  %v1271_v54 = vpack.c.bf16 %v657_v53, %v656_v52  ;;  %v844_v47 = vld [vmem:[%s1841_s9 + $0x50] sm:$0xff]  ;;  %v845_v48 = vld [vmem:[%s1841_s9 + $0x58] sm:$0xff] }
 0x161   :  { %v386_v58 = vmax.f32 %v383_v55, 0.0  ;;  %v486_v55 = vld [vmem:[#allocation12 + $0x1] ss:$8 sm:$0x3]  ;;  %v849_v53 = vld [vmem:[%s1841_s9 + $0x78] sm:$0xff] }
 0x162   :  { %1268 = vmatpush3.bf16.msra.mxu1 %v1267_v49  ;;  %v491_v56 = vrot.slane %v486_v55, %v370_v44  ;;  %v1313_v49 = vpack.c.bf16 %v845_v48, %v844_v47  ;;  %v848_v52 = vld [vmem:[%s1841_s9 + $0x70] sm:$0xff] }
 0x163   :  { %563 = vmatmul.mubr.f32.vlgmr.msra.gmra.mrb[2].mxu0 %v386_v58  ;;  %v362_v2 = vpop.f32.mrb[2].mxu1  ;;  %1270 = vmatprep.subr.bf16.mxu1 %v1269_v42  ;;  %v1316_v42 = vpack.c.bf16 %v847_v51, %v846_v50 }
 0x164   :  { %1212 = vmatpush1.bf16.msra.mxu0 %v1211_v57  ;;  %v1056_v4 = vpop.f32.mrb[3].mxu1  ;;  %633 = vmatprep.mubr.f32.mxu0 %v1514_v1  ;;  %v385_v43 = vadd.f32 %v379_v35, %v362_v2  ;;  %v495_v57 = vrot.slane %v486_v55, %v374_v41  ;;  %v749_v41 = vld [vmem:[%s1840_s8 + $0x18] sm:$0xff]  ;;  %v838_v35 = vld [vmem:[%s1841_s9 + $0x20] sm:$0xff]  ;;  %v762_v55 = vld [vmem:[#allocation12 + $0x3] ss:$0 sm:$0xff] }
 0x165   :  { %1214 = vmatprep.subr.bf16.mxu0 %v1213_v59  ;;  %v1277_v44 = vpack.c.bf16 %v749_v41, %v748_v40 }
 0x166   :  { %v388_v46 = vmax.f32 %v385_v43, 0.0  ;;  %1272 = vmatpush3.bf16.msra.mxu1 %v1271_v54  ;;  %v842_v43 = vld [vmem:[%s1841_s9 + $0x40] sm:$0xff]  ;;  %v1319_v54 = vpack.c.bf16 %v849_v53, %v848_v52 }
 0x167   :  { %1273 = vmatprep.subr.bf16.mxu1 %v1512_v0 }
 0x168   :  { %1216 = vmatpush1.bf16.msra.mxu0 %v1215_v3  ;;  %v1274_v3 = vpack.c.bf16 %v747_v62, %v746_v61 }
 0x169   :  { %1218 = vmatprep.subr.bf16.mxu0 %v1217_v5  ;;  %v750_v5 = vld [vmem:[%s1840_s8 + $0x20] sm:$0xff] }
 0x16a   :  { %v1280_v7 = vpack.c.bf16 %v751_v6, %v750_v5 }
 0x16c   :  { %1220 = vmatpush1.bf16.msra.mxu0 %v1219_v10  ;;  %v1283_v10 = vpack.c.bf16 %v753_v9, %v752_v8 }
 0x16d   :  { %1222 = vmatprep.subr.bf16.mxu0 %v1221_v11  ;;  %v754_v11 = vld [vmem:[%s1840_s8 + $0x40] sm:$0xff] }
 0x16e   :  { %v1286_v13 = vpack.c.bf16 %v755_v12, %v754_v11 }
 0x170   :  { %1224 = vmatpush1.bf16.msra.mxu0 %v1223_v16  ;;  %v1289_v16 = vpack.c.bf16 %v757_v15, %v756_v14 }
 0x171   :  { %1226 = vmatprep.subr.bf16.mxu0 %v1225_v17  ;;  %v758_v17 = vld [vmem:[%s1840_s8 + $0x60] sm:$0xff] }
 0x172   :  { %v1292_v19 = vpack.c.bf16 %v759_v18, %v758_v17 }
 0x174   :  { %1228 = vmatpush1.bf16.msra.mxu0 %v1227_v22  ;;  %v1295_v22 = vpack.c.bf16 %v761_v21, %v760_v20 }
 0x175   :  { %1230 = vmatprep.subr.bf16.mxu0 %v1229_v23 }
 0x178   :  { %1232 = vmatpush1.bf16.msra.mxu0 %v1231_v29 }
 0x179   :  { %1234 = vmatprep.subr.bf16.mxu0 %v1233_v30  ;;  %v1298_v30 = vpack.c.bf16 %v835_v28, %v834_v27 }
 0x17c   :  { %1236 = vmatpush1.bf16.msra.mxu0 %v1235_v36  ;;  %v839_v36 = vld [vmem:[%s1841_s9 + $0x28] sm:$0xff] }
 0x17d   :  { %1238 = vmatprep.subr.bf16.mxu0 %v1237_v37  ;;  %v1304_v37 = vpack.c.bf16 %v839_v36, %v838_v35 }
 0x180   :  { %1240 = vmatpush1.bf16.msra.mxu0 %v1239_v45  ;;  %v843_v45 = vld [vmem:[%s1841_s9 + $0x48] sm:$0xff] }
 0x183   :  { %634 = vmatmul.mubr.f32.vlgmr.msra.gmra.mrb[2].mxu0 %v388_v46  ;;  %v1310_v46 = vpack.c.bf16 %v843_v45, %v842_v43 }
 0x256   :  { %v635_v58 = vpop.f32.mrb[2].mxu0 }
 0x257   :  { %v1321_v59 = vadd.f32 %v635_v58, %v491_v56  ;;  %v637_v60 = vpop.f32.mrb[3].mxu0 }
 0x258   :  { %v1322_v63 = vadd.f32 %v637_v60, %v495_v57  ;;  %v850_v60 = vld [vmem:[#allocation12 + $0x4] ss:$0 sm:$0xff] }
 0x259   :  { %v640_v4 = vmax.f32 %v1321_v59, 0.0 }
 0x25a   :  { %v641_v2 = vmax.f32 %v1322_v63, 0.0 }
 0x25c   :  { %739 = vmatprep.mubr.f32.mxu1 %v641_v2 }
 0x25d   :  { %740 = vmatmul.mubr.f32.vlgmr.msra.gmra.mrb[4].mxu1 %v640_v4 }
 0x25e   :  { %1275 = vmatpush3.bf16.msra.mxu1 %v1274_v3  ;;  %1089 = vmatprep.mubr.msk.f32.mxu1 %vm1513_vm0, %v1514_v1 }
 0x25f   :  { %1276 = vmatprep.subr.bf16.mxu1 %v1512_v0 }
 0x262   :  { %1278 = vmatpush3.bf16.msra.mxu1 %v1277_v44 }
 0x263   :  { %1279 = vmatprep.subr.bf16.mxu1 %v1512_v0 }
 0x266   :  { %1281 = vmatpush3.bf16.msra.mxu1 %v1280_v7 }
 0x267   :  { %1282 = vmatprep.subr.bf16.mxu1 %v1512_v0 }
 0x26a   :  { %1284 = vmatpush3.bf16.msra.mxu1 %v1283_v10 }
 0x26b   :  { %1285 = vmatprep.subr.bf16.mxu1 %v1512_v0 }
 0x26e   :  { %1287 = vmatpush3.bf16.msra.mxu1 %v1286_v13 }
 0x26f   :  { %1288 = vmatprep.subr.bf16.mxu1 %v1512_v0 }
 0x272   :  { %1290 = vmatpush3.bf16.msra.mxu1 %v1289_v16 }
 0x273   :  { %1291 = vmatprep.subr.bf16.mxu1 %v1512_v0 }
 0x276   :  { %1293 = vmatpush3.bf16.msra.mxu1 %v1292_v19 }
 0x277   :  { %1294 = vmatprep.subr.bf16.mxu1 %v1512_v0 }
 0x27a   :  { %1296 = vmatpush3.bf16.msra.mxu1 %v1295_v22 }
 0x27b   :  { %1297 = vmatprep.subr.bf16.mxu1 %v1512_v0 }
 0x330   :  { %v983_v23 = vpop.f32.mrb[4].mxu1 }
 0x331   :  { %v984_v25 = vpop.f32.mrb[5].mxu1 }
 0x332   :  { %v985_v26 = vadd.f32 %v984_v25, %v983_v23 }
 0x334   :  { %v742_v29 = vadd.f32 %v985_v26, %v674_v24 }
 0x336   :  { %v745_v31 = vmax.f32 %v742_v29, 0.0 }
 0x338   :  { %1090 = vmatmul.mubr.f32.vlgmr.msra.gmra.mrb[6].mxu1 %v745_v31 }
 0x339   :  { %1299 = vmatpush3.bf16.msra.mxu1 %v1298_v30  ;;  %1124 = vmatprep.mubr.msk.f32.mxu1 %vm1513_vm0, %v1514_v1  ;;  %v841_v1 = vld [vmem:[%s1841_s9 + $0x38] sm:$0xff] }
 0x33a   :  { %1300 = vmatprep.subr.bf16.mxu1 %v1512_v0  ;;  %v1307_v39 = vpack.c.bf16 %v841_v1, %v840_v38 }
 0x33d   :  { %1302 = vmatpush3.bf16.msra.mxu1 %v1301_v34 }
 0x33e   :  { %1303 = vmatprep.subr.bf16.mxu1 %v1512_v0 }
 0x341   :  { %1305 = vmatpush3.bf16.msra.mxu1 %v1304_v37 }
 0x342   :  { %1306 = vmatprep.subr.bf16.mxu1 %v1512_v0 }
 0x345   :  { %1308 = vmatpush3.bf16.msra.mxu1 %v1307_v39 }
 0x346   :  { %1309 = vmatprep.subr.bf16.mxu1 %v1512_v0 }
 0x349   :  { %1311 = vmatpush3.bf16.msra.mxu1 %v1310_v46 }
 0x34a   :  { %1312 = vmatprep.subr.bf16.mxu1 %v1512_v0 }
 0x34d   :  { %1314 = vmatpush3.bf16.msra.mxu1 %v1313_v49 }
 0x34e   :  { %1315 = vmatprep.subr.bf16.mxu1 %v1512_v0 }
 0x351   :  { %1317 = vmatpush3.bf16.msra.mxu1 %v1316_v42 }
 0x352   :  { %1318 = vmatprep.subr.bf16.mxu1 %v1512_v0 }
 0x355   :  { %1320 = vmatpush3.bf16.msra.mxu1 %v1319_v54 }
 0x40b   :  { %v829_v56 = vpop.f32.mrb[6].mxu1 }
 0x40c   :  { %v830_v57 = vadd.f32 %v829_v56, %v762_v55  ;;  %v1091_v58 = vpop.f32.mrb[7].mxu1 }
 0x40e   :  { %v833_v59 = vmax.f32 %v830_v57, 0.0 }
 0x410   :  { %1125 = vmatmul.mubr.f32.vlgmr.msra.gmra.mrb[8].mxu1 %v833_v59 }
 0x4e3   :  { %v917_v61 = vpop.f32.mrb[8].mxu1 }
 0x4e4   :  { %v918_v0 = vadd.f32 %v917_v61, %v850_v60  ;;  %v1126_v62 = vpop.f32.mrb[9].mxu1 }
 0x4e6   :  { %922 = vst.msk [vmem:[%s1843_s11] sm:$0xff] %vm921_vm4, %v918_v0 }
 0x4e7   :  { %927 = vsyncpa [#allocation3], 1 }
 0x4e8   :  { %928 = vsyncpa [#allocation5], 1 }
 0x4e9   :  { %929 = vsyncpa [#allocation8], 1 }
 0x4ea   :  { %930 = vsyncpa [#allocation11], 1 }

</bundles_post_ra>
